<compile_context>
chip_gen: v7x
topology: tpu7x:2x2x1
jax: 0.10.0
libtpu: 0.0.40
codegen_flags: <defaults>
</compile_context>

<pallas_src>
import functools

import jax
import jax.numpy as jnp
from jax.experimental import pallas as pl
from jax.experimental.pallas import tpu as pltpu


def _mpn_attention_kernel(adj_ref, x_ref, wc_ref, bc_ref, wot_ref, bo_ref,
                          attn_t_ref, map_ref, *, dout, agg_in_bf16):
    TB, N, _ = adj_ref.shape
    D = x_ref.shape[-1]
    K = wc_ref.shape[-1] - dout

    x = x_ref[...]                                                       # (TB, N, D) f32
    adj = adj_ref[...]                                                   # (TB, N, N) bf16

    # --- GIN aggregation (eps = 0): agg = adj @ x + x -------------------------------
    if agg_in_bf16:
        # bf16 x bf16 on the MXU, f32 accumulation; adj 0/1 entries are exact in bf16.
        agg = jnp.einsum("bij,bjd->bid", adj, x.astype(jnp.bfloat16),
                         preferred_element_type=jnp.float32) + x
    else:
        # Exact f32 path (validation): widen adj on-chip.
        agg = jnp.einsum("bij,bjd->bid", adj.astype(jnp.float32), x,
                         preferred_element_type=jnp.float32) + x

    # Flatten the batch block so the fused shared-weight matmul presents a tall M.
    agg2 = agg.reshape(TB * N, D)
    hid = jnp.dot(agg2, wc_ref[...],
                  preferred_element_type=jnp.float32) + bc_ref[...]      # (TB*N, Dout+K)
    feats2 = hid[:, :dout]                                               # (TB*N, Dout)
    f2 = hid[:, dout:]                                                   # (TB*N, K) (zero bias pad)

    # mapper = output_net(f^T @ x)  (contract the node dim per graph)
    f3 = f2.reshape(TB, N, K)
    fx = jnp.einsum("bnk,bnd->bkd", f3, x,
                    preferred_element_type=jnp.float32)                  # (TB, K, D)
    mapper2 = jnp.dot(fx.reshape(TB * K, D), wot_ref[...],
                      preferred_element_type=jnp.float32) + bo_ref[...]  # (TB*K, Dout)
    mapper3 = mapper2.reshape(TB, K, dout)

    # attention scores, produced directly in the transposed (lane-dense N) layout.
    feats3 = feats2.reshape(TB, N, dout)
    z = jnp.einsum("bkd,bnd->bkn", mapper3, feats3,
                   preferred_element_type=jnp.float32)                   # (TB, K, N)

    # --- sparsemax along the cluster dim (K = sublane axis, sort-free, exact f32) ---
    z = z - jnp.max(z, axis=1, keepdims=True)          # shift-invariant, stable
    rank = jnp.zeros_like(z)
    csum = jnp.zeros_like(z)
    # K is small & static: fully unrolled; each step is a cheap sublane slice with
    # full-lane (N-wide) VPU work.  Only three small accumulators stay live.
    for j in range(K):
        zj = z[:, j:j + 1, :]                           # (TB, 1, N)
        ge = (zj >= z).astype(z.dtype)                  # [z_j >= z_i] per node column
        rank = rank + ge
        csum = csum + ge * zj
    support = (1.0 + rank * z > csum).astype(z.dtype)
    ksup = jnp.sum(support, axis=1, keepdims=True)      # >= 1 always
    ssup = jnp.sum(support * z, axis=1, keepdims=True)
    tau = (ssup - 1.0) / ksup
    attn_t_ref[...] = jnp.maximum(z - tau, 0.0)         # (TB, K, N), lane-dense store
    map_ref[...] = mapper3


def _chip_info():
    """Best-effort (physical VMEM bytes, chip has >1 TensorCore sharing the grid)."""
    phys = 64 << 20                      # conservative fallback (v7x-sized)
    try:
        info = pltpu.get_tpu_info()
        phys = int(getattr(info, "vmem_capacity_bytes", phys) or phys)
    except Exception:
        pass
    multi_core = False
    try:
        kind = jax.devices()[0].device_kind.lower()
        # v7x and the v4 / v5p "megacore" parts expose 2 TensorCores to a parallel grid.
        multi_core = ("7" in kind) or ("v4" in kind) or ("v5p" in kind)
    except Exception:
        pass
    return phys, multi_core


def _pick_block(B, fits_fn, multi_core):
    """Largest batch block dividing B that fits VMEM; even step count on multi-TC chips."""
    divisors = [t for t in range(1, B + 1) if B % t == 0]
    fitting = [t for t in divisors if fits_fn(t)] or [1]
    if multi_core:
        even = [t for t in fitting if (B // t) % 2 == 0]
        if even:
            return max(even)
    return max(fitting)            # single-TC: grid is a serial loop, so don't split


def mpn_attention(adj, x, params, *, agg_in_bf16=True, attn_layout="bnk"):
    B, N, D = x.shape
    Dout = params["w_feat"].shape[1]
    K = params["w_map"].shape[1]
    dcat = Dout + K
    assert adj.shape == (B, N, N)
    assert D == Dout, "learned=False/concat=False branch requires input_size == output_size"
    assert params["b_feat"].shape == (1, Dout) and params["b_out"].shape == (1, Dout)
    assert attn_layout in ("bnk", "bkn")

    # Host-side prep.
    # NOTE: adjacency is shipped as bf16 (halves HBM traffic). This is exact only for
    # 0/1 (or power-of-two) entries; callers passing weighted/normalized adjacency
    # should validate adj == adj.astype(bf16).astype(f32) (the demo below does).
    adj_c = adj.astype(jnp.bfloat16)
    w_cat = jnp.concatenate([params["w_feat"], params["w_map"]], axis=1)       # (D, Dout+K)
    b_cat = jnp.concatenate([params["b_feat"],
                             jnp.zeros((1, K), params["b_feat"].dtype)], axis=1)
    w_out_t = jnp.transpose(params["w_out"])                                   # (in, out)

    phys_vmem, multi_core = _chip_info()
    budget = int(phys_vmem * 0.80)       # leave compiler scratch / pipelining headroom

    def block_bytes(tb):
        # double-buffered I/O blocks + resident weights + f32 intermediates
        io = 2 * (tb * N * N * 2 + tb * N * D * 4 + tb * K * N * 4 + tb * K * Dout * 4)
        wts = 2 * 4 * (D * dcat + dcat + D * Dout + Dout)
        interm = 4 * tb * (N * D + N * dcat + K * D + K * Dout + 8 * K * N)
        interm += (2 * tb * N * D) if agg_in_bf16 else (4 * tb * N * N)
        return io + wts + interm

    tb = _pick_block(B, lambda t: block_bytes(t) <= budget, multi_core)
    grid = (B // tb,)
    vmem_limit = int(min(budget, max(32 << 20, 2 * block_bytes(tb))))

    flops = 2 * B * (N * N * D            # adj @ x
                     + N * D * dcat       # fused feat/mapper nets
                     + N * K * D          # f^T @ x
                     + K * D * Dout       # output_net
                     + K * Dout * N)      # mapper @ feats^T
    bytes_accessed = (B * N * N * 2 + B * N * D * 4
                      + B * (K * N + K * Dout) * 4
                      + 4 * (D * dcat + dcat + D * Dout + Dout))
    cost = pl.CostEstimate(flops=flops, transcendentals=0, bytes_accessed=bytes_accessed)

    kernel = functools.partial(_mpn_attention_kernel, dout=Dout, agg_in_bf16=agg_in_bf16)

    grid_spec = pltpu.PrefetchScalarGridSpec(
        num_scalar_prefetch=0,
        grid=grid,
        in_specs=[
            pl.BlockSpec((tb, N, N), lambda b: (b, 0, 0)),      # adj (bf16)
            pl.BlockSpec((tb, N, D), lambda b: (b, 0, 0)),      # x
            pl.BlockSpec((D, dcat), lambda b: (0, 0)),          # [W_feat | W_map]
            pl.BlockSpec((1, dcat), lambda b: (0, 0)),          # [b_feat | 0]
            pl.BlockSpec((D, Dout), lambda b: (0, 0)),          # W_out^T (in, out)
            pl.BlockSpec((1, Dout), lambda b: (0, 0)),          # b_out
        ],
        out_specs=[
            pl.BlockSpec((tb, K, N), lambda b: (b, 0, 0)),      # attn^T (lane-dense N)
            pl.BlockSpec((tb, K, Dout), lambda b: (b, 0, 0)),   # mapper
        ],
    )

    attn_t, mapper = pl.pallas_call(
        kernel,
        out_shape=(
            jax.ShapeDtypeStruct((B, K, N), jnp.float32),
            jax.ShapeDtypeStruct((B, K, Dout), jnp.float32),
        ),
        grid_spec=grid_spec,
        compiler_params=pltpu.CompilerParams(
            dimension_semantics=("parallel",),
            vmem_limit_bytes=vmem_limit),
        cost_estimate=cost,
    )(adj_c, x, w_cat, b_cat, w_out_t, params["b_out"])

    if attn_layout == "bkn":
        # Consumer accepts the kernel-native layout: skip the extra HBM transpose pass.
        return attn_t, mapper
    return jnp.swapaxes(attn_t, -1, -2), mapper


def reference(adj, x, params, agg_in_bf16=False):
    """Plain-JAX reference. agg_in_bf16=True mirrors the kernel's fast aggregation path."""
    if agg_in_bf16:
        ax = jnp.einsum("bij,bjd->bid", adj.astype(jnp.bfloat16), x.astype(jnp.bfloat16),
                        preferred_element_type=jnp.float32)
    else:
        ax = jnp.einsum("bij,bjd->bid", adj, x)
    agg = ax + x
    feats = agg @ params["w_feat"] + params["b_feat"]
    f = agg @ params["w_map"]
    fx = jnp.einsum("bnk,bnd->bkd", f, x)
    mapper = jnp.einsum("bkd,od->bko", fx, params["w_out"]) + params["b_out"]
    attn = jnp.einsum("bnd,bkd->bnk", feats, mapper)
    # sparsemax (sorted formulation)
    z = attn - jnp.max(attn, -1, keepdims=True)
    zs = jnp.sort(z, axis=-1)[..., ::-1]
    kk = jnp.arange(1, z.shape[-1] + 1, dtype=z.dtype)
    cs = jnp.cumsum(zs, -1)
    supp = 1.0 + kk * zs > cs
    ks = jnp.sum(supp.astype(z.dtype), -1, keepdims=True)
    tau = (jnp.sum(jnp.where(supp, zs, 0.0), -1, keepdims=True) - 1.0) / ks
    return jnp.maximum(z - tau, 0.0), mapper


if __name__ == "__main__":
    B, N = 4, 16
    input_size = output_size = 32     # must be equal for this branch of the module
    ncluster = 8

    key = jax.random.PRNGKey(0)
    k_adj, k_x, k1, k2, k3, k4, k5 = jax.random.split(key, 7)

    # Symmetric 0/1 adjacency with self-loops.
    a = (jax.random.uniform(k_adj, (B, N, N)) > 0.6).astype(jnp.float32)
    adj = jnp.clip(a + jnp.swapaxes(a, -1, -2) + jnp.eye(N)[None], 0.0, 1.0)
    x = jax.random.normal(k_x, (B, N, input_size), dtype=jnp.float32)

    # Deterministic synthetic parameter init (xavier-normal-ish scaling).
    def xavier(k, shape, gain=1.414):
        fan_in, fan_out = shape[-2], shape[-1]
        std = gain * (2.0 / (fan_in + fan_out)) ** 0.5
        return std * jax.random.normal(k, shape, dtype=jnp.float32)

    params = {
        "w_feat": xavier(k1, (input_size, output_size)),        # GIN feat_net weight (in, out)
        "b_feat": 0.01 * jax.random.normal(k2, (1, output_size), dtype=jnp.float32),
        "w_map": xavier(k3, (input_size, ncluster)),            # GIN mapper_net weight, no bias
        "w_out": xavier(k4, (output_size, output_size)),        # nn.Linear weight (out, in)
        "b_out": 0.01 * jax.random.normal(k5, (1, output_size), dtype=jnp.float32),
    }

    # Guard the bf16-adjacency optimization: 0/1 entries must round-trip exactly.
    assert bool(jnp.all(adj.astype(jnp.bfloat16).astype(jnp.float32) == adj))

    # Fast path (default): bf16 adjacency product, f32 accumulation everywhere.
    attn, mapper = mpn_attention(adj, x, params)
    jax.block_until_ready((attn, mapper))
    assert attn.shape == (B, N, ncluster) and mapper.shape == (B, ncluster, output_size)

    # Exact f32 path: validates module semantics tightly.
    attn_x, mapper_x = mpn_attention(adj, x, params, agg_in_bf16=False)
    jax.block_until_ready((attn_x, mapper_x))

    attn_ref, mapper_ref = reference(adj, x, params)
    attn_bref, mapper_bref = reference(adj, x, params, agg_in_bf16=True)

    # Exact kernel vs faithful f32 reference.
    assert jnp.allclose(attn_x, attn_ref, atol=5e-4, rtol=5e-4)
    assert jnp.allclose(mapper_x, mapper_ref, atol=2e-3, rtol=2e-3)
    # Fast kernel vs matched-precision reference (same bf16 aggregation).
    assert jnp.allclose(attn, attn_bref, atol=2e-2, rtol=1e-3)
    assert jnp.allclose(mapper, mapper_bref, atol=1e-2, rtol=1e-3)
    # Fast kernel vs faithful reference: bounded drift from the bf16 aggregation.
    assert float(jnp.mean(jnp.abs(attn - attn_ref))) < 5e-2
    assert jnp.allclose(mapper, mapper_ref, atol=0.5, rtol=5e-2)
    # sparsemax rows are a probability simplex.
    assert jnp.allclose(jnp.sum(attn, -1), 1.0, atol=1e-3)
    assert jnp.allclose(jnp.sum(attn_x, -1), 1.0, atol=1e-4)

    print("KERNEL_OK")
</pallas_src>

<mosaic_0001>
module attributes {stable_mosaic.version = 11 : i64} {
  func.func @_mpn_attention_kernel(%arg0: i32, %arg1: memref<4x16x16xbf16, #tpu.memory_space<vmem>>, %arg2: memref<4x16x32xf32, #tpu.memory_space<vmem>>, %arg3: memref<32x40xf32, #tpu.memory_space<vmem>>, %arg4: memref<1x40xf32, #tpu.memory_space<vmem>>, %arg5: memref<32x32xf32, #tpu.memory_space<vmem>>, %arg6: memref<1x32xf32, #tpu.memory_space<vmem>>, %arg7: memref<4x8x16xf32, #tpu.memory_space<vmem>>, %arg8: memref<4x8x32xf32, #tpu.memory_space<vmem>>) attributes {dimension_semantics = [#tpu.dimension_semantics<parallel>], iteration_bounds = array<i64: 1>, scalar_prefetch = 0 : i64, scratch_operands = 0 : i64, tpu.core_type = #tpu.core_type<tc>, window_params = [{transform_indices = @transform_0, window_bounds = array<i64: 4, 16, 16>}, {transform_indices = @transform_1, window_bounds = array<i64: 4, 16, 32>}, {pipeline_mode = #tpu.pipeline_mode<synchronous>, transform_indices = @transform_2, window_bounds = array<i64: 32, 40>}, {pipeline_mode = #tpu.pipeline_mode<synchronous>, transform_indices = @transform_3, window_bounds = array<i64: 1, 40>}, {pipeline_mode = #tpu.pipeline_mode<synchronous>, transform_indices = @transform_4, window_bounds = array<i64: 32, 32>}, {pipeline_mode = #tpu.pipeline_mode<synchronous>, transform_indices = @transform_5, window_bounds = array<i64: 1, 32>}, {transform_indices = @transform_6, window_bounds = array<i64: 4, 8, 16>}, {transform_indices = @transform_7, window_bounds = array<i64: 4, 8, 32>}]} {
    %c0 = arith.constant 0 : index
    %c0_0 = arith.constant 0 : index
    %c0_1 = arith.constant 0 : index
    %0 = vector.load %arg2[%c0, %c0_0, %c0_1] : memref<4x16x32xf32, #tpu.memory_space<vmem>>, vector<4x16x32xf32>
    %c0_2 = arith.constant 0 : index
    %c0_3 = arith.constant 0 : index
    %c0_4 = arith.constant 0 : index
    %1 = vector.load %arg1[%c0_2, %c0_3, %c0_4] : memref<4x16x16xbf16, #tpu.memory_space<vmem>>, vector<4x16x16xbf16>
    %2 = arith.truncf %0 : vector<4x16x32xf32> to vector<4x16x32xbf16>
    "tpu.trace_start"() <{level = 10 : i32, message = "bij,bjd->bid"}> : () -> ()
    %cst = arith.constant dense<0.000000e+00> : vector<4x16x32xf32>
    %3 = tpu.matmul %1, %2, %cst {dimension_numbers = #tpu.dot_dimension_numbers<[2], [1], [1], [2], [0, 0, 0, 1, 1, 2], [0], [0]>} : vector<4x16x16xbf16>, vector<4x16x32xbf16>, vector<4x16x32xf32> -> vector<4x16x32xf32>
    "tpu.trace_stop"() : () -> ()
    %4 = arith.addf %3, %0 : vector<4x16x32xf32>
    %5 = vector.shape_cast %4 : vector<4x16x32xf32> to vector<64x32xf32>
    %c0_5 = arith.constant 0 : index
    %c0_6 = arith.constant 0 : index
    %6 = vector.load %arg3[%c0_5, %c0_6] : memref<32x40xf32, #tpu.memory_space<vmem>>, vector<32x40xf32>
    %cst_7 = arith.constant dense<0.000000e+00> : vector<64x40xf32>
    %7 = tpu.matmul %5, %6, %cst_7 {dimension_numbers = #tpu.dot_dimension_numbers<[1], [0], [0], [1], [0, 0, 1, 1], [], []>} : vector<64x32xf32>, vector<32x40xf32>, vector<64x40xf32> -> vector<64x40xf32>
    %c0_8 = arith.constant 0 : index
    %c0_9 = arith.constant 0 : index
    %8 = vector.load %arg4[%c0_8, %c0_9] : memref<1x40xf32, #tpu.memory_space<vmem>>, vector<1x40xf32>
    %9 = vector.broadcast %8 : vector<1x40xf32> to vector<64x40xf32>
    %10 = arith.addf %7, %9 : vector<64x40xf32>
    %11 = vector.extract_strided_slice %10 {offsets = [0, 0], sizes = [64, 32], strides = [1, 1]} : vector<64x40xf32> to vector<64x32xf32>
    %12 = vector.extract_strided_slice %10 {offsets = [0, 32], sizes = [64, 8], strides = [1, 1]} : vector<64x40xf32> to vector<64x8xf32>
    %13 = vector.shape_cast %12 : vector<64x8xf32> to vector<4x16x8xf32>
    "tpu.trace_start"() <{level = 10 : i32, message = "bnk,bnd->bkd"}> : () -> ()
    %cst_10 = arith.constant dense<0.000000e+00> : vector<4x8x32xf32>
    %14 = tpu.matmul %13, %0, %cst_10 {dimension_numbers = #tpu.dot_dimension_numbers<[1], [1], [2], [2], [0, 0, 0, 2, 1, 2], [0], [0]>} : vector<4x16x8xf32>, vector<4x16x32xf32>, vector<4x8x32xf32> -> vector<4x8x32xf32>
    "tpu.trace_stop"() : () -> ()
    %15 = vector.shape_cast %14 : vector<4x8x32xf32> to vector<32x32xf32>
    %c0_11 = arith.constant 0 : index
    %c0_12 = arith.constant 0 : index
    %16 = vector.load %arg5[%c0_11, %c0_12] : memref<32x32xf32, #tpu.memory_space<vmem>>, vector<32x32xf32>
    %cst_13 = arith.constant dense<0.000000e+00> : vector<32x32xf32>
    %17 = tpu.matmul %15, %16, %cst_13 {dimension_numbers = #tpu.dot_dimension_numbers<[1], [0], [0], [1], [0, 0, 1, 1], [], []>} : vector<32x32xf32>, vector<32x32xf32>, vector<32x32xf32> -> vector<32x32xf32>
    %c0_14 = arith.constant 0 : index
    %c0_15 = arith.constant 0 : index
    %18 = vector.load %arg6[%c0_14, %c0_15] : memref<1x32xf32, #tpu.memory_space<vmem>>, vector<1x32xf32>
    %19 = vector.broadcast %18 : vector<1x32xf32> to vector<32x32xf32>
    %20 = arith.addf %17, %19 : vector<32x32xf32>
    %21 = vector.shape_cast %20 : vector<32x32xf32> to vector<4x8x32xf32>
    %22 = vector.shape_cast %11 : vector<64x32xf32> to vector<4x16x32xf32>
    "tpu.trace_start"() <{level = 10 : i32, message = "bkd,bnd->bkn"}> : () -> ()
    %cst_16 = arith.constant dense<0.000000e+00> : vector<4x8x16xf32>
    %23 = tpu.matmul %21, %22, %cst_16 {dimension_numbers = #tpu.dot_dimension_numbers<[2], [2], [1], [1], [0, 0, 0, 1, 1, 1], [0], [0]>} : vector<4x8x32xf32>, vector<4x16x32xf32>, vector<4x8x16xf32> -> vector<4x8x16xf32>
    "tpu.trace_stop"() : () -> ()
    %cst_17 = arith.constant dense<0xFF800000> : vector<4x16xf32>
    %24 = vector.multi_reduction <maximumf>, %23, %cst_17 [1] : vector<4x8x16xf32> to vector<4x16xf32>
    %25 = vector.shape_cast %24 : vector<4x16xf32> to vector<4x1x16xf32>
    %26 = vector.broadcast %25 : vector<4x1x16xf32> to vector<4x8x16xf32>
    %27 = arith.subf %23, %26 : vector<4x8x16xf32>
    %cst_18 = arith.constant 0.000000e+00 : f32
    %28 = vector.broadcast %cst_18 : f32 to vector<4x8x16xf32>
    %cst_19 = arith.constant 0.000000e+00 : f32
    %29 = vector.broadcast %cst_19 : f32 to vector<4x8x16xf32>
    %30 = vector.extract_strided_slice %27 {offsets = [0, 0, 0], sizes = [4, 1, 16], strides = [1, 1, 1]} : vector<4x8x16xf32> to vector<4x1x16xf32>
    %31 = vector.broadcast %30 : vector<4x1x16xf32> to vector<4x8x16xf32>
    %32 = arith.cmpf oge, %31, %27 : vector<4x8x16xf32>
    %33 = arith.extui %32 : vector<4x8x16xi1> to vector<4x8x16xi32>
    %34 = arith.sitofp %33 : vector<4x8x16xi32> to vector<4x8x16xf32>
    %35 = arith.addf %28, %34 : vector<4x8x16xf32>
    %36 = vector.broadcast %30 : vector<4x1x16xf32> to vector<4x8x16xf32>
    %37 = arith.mulf %34, %36 : vector<4x8x16xf32>
    %38 = arith.addf %29, %37 : vector<4x8x16xf32>
    %39 = vector.extract_strided_slice %27 {offsets = [0, 1, 0], sizes = [4, 1, 16], strides = [1, 1, 1]} : vector<4x8x16xf32> to vector<4x1x16xf32>
    %40 = vector.broadcast %39 : vector<4x1x16xf32> to vector<4x8x16xf32>
    %41 = arith.cmpf oge, %40, %27 : vector<4x8x16xf32>
    %42 = arith.extui %41 : vector<4x8x16xi1> to vector<4x8x16xi32>
    %43 = arith.sitofp %42 : vector<4x8x16xi32> to vector<4x8x16xf32>
    %44 = arith.addf %35, %43 : vector<4x8x16xf32>
    %45 = vector.broadcast %39 : vector<4x1x16xf32> to vector<4x8x16xf32>
    %46 = arith.mulf %43, %45 : vector<4x8x16xf32>
    %47 = arith.addf %38, %46 : vector<4x8x16xf32>
    %48 = vector.extract_strided_slice %27 {offsets = [0, 2, 0], sizes = [4, 1, 16], strides = [1, 1, 1]} : vector<4x8x16xf32> to vector<4x1x16xf32>
    %49 = vector.broadcast %48 : vector<4x1x16xf32> to vector<4x8x16xf32>
    %50 = arith.cmpf oge, %49, %27 : vector<4x8x16xf32>
    %51 = arith.extui %50 : vector<4x8x16xi1> to vector<4x8x16xi32>
    %52 = arith.sitofp %51 : vector<4x8x16xi32> to vector<4x8x16xf32>
    %53 = arith.addf %44, %52 : vector<4x8x16xf32>
    %54 = vector.broadcast %48 : vector<4x1x16xf32> to vector<4x8x16xf32>
    %55 = arith.mulf %52, %54 : vector<4x8x16xf32>
    %56 = arith.addf %47, %55 : vector<4x8x16xf32>
    %57 = vector.extract_strided_slice %27 {offsets = [0, 3, 0], sizes = [4, 1, 16], strides = [1, 1, 1]} : vector<4x8x16xf32> to vector<4x1x16xf32>
    %58 = vector.broadcast %57 : vector<4x1x16xf32> to vector<4x8x16xf32>
    %59 = arith.cmpf oge, %58, %27 : vector<4x8x16xf32>
    %60 = arith.extui %59 : vector<4x8x16xi1> to vector<4x8x16xi32>
    %61 = arith.sitofp %60 : vector<4x8x16xi32> to vector<4x8x16xf32>
    %62 = arith.addf %53, %61 : vector<4x8x16xf32>
    %63 = vector.broadcast %57 : vector<4x1x16xf32> to vector<4x8x16xf32>
    %64 = arith.mulf %61, %63 : vector<4x8x16xf32>
    %65 = arith.addf %56, %64 : vector<4x8x16xf32>
    %66 = vector.extract_strided_slice %27 {offsets = [0, 4, 0], sizes = [4, 1, 16], strides = [1, 1, 1]} : vector<4x8x16xf32> to vector<4x1x16xf32>
    %67 = vector.broadcast %66 : vector<4x1x16xf32> to vector<4x8x16xf32>
    %68 = arith.cmpf oge, %67, %27 : vector<4x8x16xf32>
    %69 = arith.extui %68 : vector<4x8x16xi1> to vector<4x8x16xi32>
    %70 = arith.sitofp %69 : vector<4x8x16xi32> to vector<4x8x16xf32>
    %71 = arith.addf %62, %70 : vector<4x8x16xf32>
    %72 = vector.broadcast %66 : vector<4x1x16xf32> to vector<4x8x16xf32>
    %73 = arith.mulf %70, %72 : vector<4x8x16xf32>
    %74 = arith.addf %65, %73 : vector<4x8x16xf32>
    %75 = vector.extract_strided_slice %27 {offsets = [0, 5, 0], sizes = [4, 1, 16], strides = [1, 1, 1]} : vector<4x8x16xf32> to vector<4x1x16xf32>
    %76 = vector.broadcast %75 : vector<4x1x16xf32> to vector<4x8x16xf32>
    %77 = arith.cmpf oge, %76, %27 : vector<4x8x16xf32>
    %78 = arith.extui %77 : vector<4x8x16xi1> to vector<4x8x16xi32>
    %79 = arith.sitofp %78 : vector<4x8x16xi32> to vector<4x8x16xf32>
    %80 = arith.addf %71, %79 : vector<4x8x16xf32>
    %81 = vector.broadcast %75 : vector<4x1x16xf32> to vector<4x8x16xf32>
    %82 = arith.mulf %79, %81 : vector<4x8x16xf32>
    %83 = arith.addf %74, %82 : vector<4x8x16xf32>
    %84 = vector.extract_strided_slice %27 {offsets = [0, 6, 0], sizes = [4, 1, 16], strides = [1, 1, 1]} : vector<4x8x16xf32> to vector<4x1x16xf32>
    %85 = vector.broadcast %84 : vector<4x1x16xf32> to vector<4x8x16xf32>
    %86 = arith.cmpf oge, %85, %27 : vector<4x8x16xf32>
    %87 = arith.extui %86 : vector<4x8x16xi1> to vector<4x8x16xi32>
    %88 = arith.sitofp %87 : vector<4x8x16xi32> to vector<4x8x16xf32>
    %89 = arith.addf %80, %88 : vector<4x8x16xf32>
    %90 = vector.broadcast %84 : vector<4x1x16xf32> to vector<4x8x16xf32>
    %91 = arith.mulf %88, %90 : vector<4x8x16xf32>
    %92 = arith.addf %83, %91 : vector<4x8x16xf32>
    %93 = vector.extract_strided_slice %27 {offsets = [0, 7, 0], sizes = [4, 1, 16], strides = [1, 1, 1]} : vector<4x8x16xf32> to vector<4x1x16xf32>
    %94 = vector.broadcast %93 : vector<4x1x16xf32> to vector<4x8x16xf32>
    %95 = arith.cmpf oge, %94, %27 : vector<4x8x16xf32>
    %96 = arith.extui %95 : vector<4x8x16xi1> to vector<4x8x16xi32>
    %97 = arith.sitofp %96 : vector<4x8x16xi32> to vector<4x8x16xf32>
    %98 = arith.addf %89, %97 : vector<4x8x16xf32>
    %99 = vector.broadcast %93 : vector<4x1x16xf32> to vector<4x8x16xf32>
    %100 = arith.mulf %97, %99 : vector<4x8x16xf32>
    %101 = arith.addf %92, %100 : vector<4x8x16xf32>
    %102 = arith.mulf %98, %27 : vector<4x8x16xf32>
    %cst_20 = arith.constant 1.000000e+00 : f32
    %103 = vector.broadcast %cst_20 : f32 to vector<4x8x16xf32>
    %104 = arith.addf %103, %102 : vector<4x8x16xf32>
    %105 = arith.cmpf ogt, %104, %101 : vector<4x8x16xf32>
    %106 = arith.extui %105 : vector<4x8x16xi1> to vector<4x8x16xi32>
    %107 = arith.sitofp %106 : vector<4x8x16xi32> to vector<4x8x16xf32>
    %cst_21 = arith.constant dense<0.000000e+00> : vector<4x16xf32>
    %108 = vector.multi_reduction <add>, %107, %cst_21 [1] : vector<4x8x16xf32> to vector<4x16xf32>
    %109 = vector.shape_cast %108 : vector<4x16xf32> to vector<4x1x16xf32>
    %110 = arith.mulf %107, %27 : vector<4x8x16xf32>
    %cst_22 = arith.constant dense<0.000000e+00> : vector<4x16xf32>
    %111 = vector.multi_reduction <add>, %110, %cst_22 [1] : vector<4x8x16xf32> to vector<4x16xf32>
    %112 = vector.shape_cast %111 : vector<4x16xf32> to vector<4x1x16xf32>
    %cst_23 = arith.constant 1.000000e+00 : f32
    %113 = vector.broadcast %cst_23 : f32 to vector<4x1x16xf32>
    %114 = arith.subf %112, %113 : vector<4x1x16xf32>
    %115 = arith.divf %114, %109 : vector<4x1x16xf32>
    %116 = vector.broadcast %115 : vector<4x1x16xf32> to vector<4x8x16xf32>
    %117 = arith.subf %27, %116 : vector<4x8x16xf32>
    %cst_24 = arith.constant 0.000000e+00 : f32
    %118 = vector.broadcast %cst_24 : f32 to vector<4x8x16xf32>
    %119 = arith.maximumf %117, %118 : vector<4x8x16xf32>
    %c0_25 = arith.constant 0 : index
    %c0_26 = arith.constant 0 : index
    %c0_27 = arith.constant 0 : index
    %120 = vector.load %arg7[%c0_25, %c0_26, %c0_27] : memref<4x8x16xf32, #tpu.memory_space<vmem>>, vector<4x8x16xf32>
    tpu.vector_store %arg7[%c0_25, %c0_26, %c0_27], %119 {strides = array<i32>} : memref<4x8x16xf32, #tpu.memory_space<vmem>>, vector<4x8x16xf32>,
    %c0_28 = arith.constant 0 : index
    %c0_29 = arith.constant 0 : index
    %c0_30 = arith.constant 0 : index
    %121 = vector.load %arg8[%c0_28, %c0_29, %c0_30] : memref<4x8x32xf32, #tpu.memory_space<vmem>>, vector<4x8x32xf32>
    tpu.vector_store %arg8[%c0_28, %c0_29, %c0_30], %21 {strides = array<i32>} : memref<4x8x32xf32, #tpu.memory_space<vmem>>, vector<4x8x32xf32>,
    return
  }
  func.func @transform_0(%arg0: i32) -> (i32, i32, i32) {
    %c0_i32 = arith.constant 0 : i32
    %c0_i32_0 = arith.constant 0 : i32
    %c0_i32_1 = arith.constant 0 : i32
    return %arg0, %c0_i32, %c0_i32_0 : i32, i32, i32
  }
  func.func @transform_1(%arg0: i32) -> (i32, i32, i32) {
    %c0_i32 = arith.constant 0 : i32
    %c0_i32_0 = arith.constant 0 : i32
    %c0_i32_1 = arith.constant 0 : i32
    return %arg0, %c0_i32, %c0_i32_0 : i32, i32, i32
  }
  func.func @transform_2(%arg0: i32) -> (i32, i32) {
    %c0_i32 = arith.constant 0 : i32
    %c0_i32_0 = arith.constant 0 : i32
    %c0_i32_1 = arith.constant 0 : i32
    return %c0_i32, %c0_i32_0 : i32, i32
  }
  func.func @transform_3(%arg0: i32) -> (i32, i32) {
    %c0_i32 = arith.constant 0 : i32
    %c0_i32_0 = arith.constant 0 : i32
    %c0_i32_1 = arith.constant 0 : i32
    return %c0_i32, %c0_i32_0 : i32, i32
  }
  func.func @transform_4(%arg0: i32) -> (i32, i32) {
    %c0_i32 = arith.constant 0 : i32
    %c0_i32_0 = arith.constant 0 : i32
    %c0_i32_1 = arith.constant 0 : i32
    return %c0_i32, %c0_i32_0 : i32, i32
  }
  func.func @transform_5(%arg0: i32) -> (i32, i32) {
    %c0_i32 = arith.constant 0 : i32
    %c0_i32_0 = arith.constant 0 : i32
    %c0_i32_1 = arith.constant 0 : i32
    return %c0_i32, %c0_i32_0 : i32, i32
  }
  func.func @transform_6(%arg0: i32) -> (i32, i32, i32) {
    %c0_i32 = arith.constant 0 : i32
    %c0_i32_0 = arith.constant 0 : i32
    %c0_i32_1 = arith.constant 0 : i32
    return %arg0, %c0_i32, %c0_i32_0 : i32, i32, i32
  }
  func.func @transform_7(%arg0: i32) -> (i32, i32, i32) {
    %c0_i32 = arith.constant 0 : i32
    %c0_i32_0 = arith.constant 0 : i32
    %c0_i32_1 = arith.constant 0 : i32
    return %arg0, %c0_i32, %c0_i32_0 : i32, i32, i32
  }
}

</mosaic_0001>

<bundles_post_ra>
// kernel: tpu_custom_call.1
= control target key start
LH: loop header
LB: loop body
LE: loop exit
PB: predicated region body
PF: predicated region fallthrough
CT: control target
= control target key end

     0   :  { %13 = vsyncpa [#allocation3], 0  ;;  %s2742_s0 = inlined_call_operand.hbm [shape: bf16[4,16,16], index: 0, kind: input, shape index: {}]   ;;  %s2743_s1 = inlined_call_operand.hbm [shape: f32[4,16,32], index: 1, kind: input, shape index: {}]   ;;  %s2744_s2 = inlined_call_operand.hbm [shape: f32[32,40], index: 2, kind: input, shape index: {}]   ;;  %s2745_s3 = inlined_call_operand.vmem [shape: f32[1,40], index: 3, kind: input, shape index: {}]   ;;  %s2746_s4 = inlined_call_operand.hbm [shape: f32[32,32], index: 4, kind: input, shape index: {}]   ;;  %s2747_s5 = inlined_call_operand.vmem [shape: f32[1,32], index: 5, kind: input, shape index: {}]   ;;  %s2748_s6 = inlined_call_operand.hbm [shape: f32[4,8,16], index: 6, kind: output, shape index: {0}]   ;;  %s2749_s7 = inlined_call_operand.hbm [shape: f32[4,8,32], index: 7, kind: output, shape index: {1}]  }
   0x1   :  { %14 = vsyncpa [#allocation6], 0 }
   0x2   :  { %15 = vsyncpa [#allocation9], 0 }
   0x3   :  { %16 = vsyncpa [#allocation4], 0 }
   0x4   :  { %17 = vsyncpa [#allocation12], 0  ;;  %s2260_s24 = smov [#allocation5]   ;;  %s2118_s28 = scalar_lea.hbm %s2743_s1, 1024 }
   0x5   :  { %s35_s25 = sshll.u32 %s2260_s24, 4  ;;  %p2119_p0 = scmp.ne.s32.totalorder %s2743_s1, %s2118_s28  ;;  %s36_s25 = int_to_ptr.vmem [resolvable:$true] %s35_s25 }
   0x6   :  { %p2122_p1 = scmp.lt.u32.totalorder %s2118_s28, %s2743_s1 }
   0x8   :  { %p2124_p2 = pnand %p2122_p1, %p2119_p0 }
   0xa   :  { %2127 = shalt.err (!%p2124_p2)
}
   0xb   :  { %s2128_s10 = scalar_lea.vmem %s36_s25, 1024  ;;  %p2133_p4 = scmp.lt.s32.totalorder %s36_s25, %s36_s25 }
   0xc   :  { %p2129_p3 = scmp.ne.s32.totalorder %s36_s25, %s2128_s10  ;;  %p2134_p5 = scmp.lt.s32.totalorder %s2128_s10, %s2128_s10 }
   0xe   :  { %p2135_p6 = por %p2134_p5, %p2133_p4 }
  0x10   :  { %p2136_p7 = pnand %p2135_p6, %p2129_p3 }
  0x12   :  { %2139 = shalt.err (!%p2136_p7)
}
  0x13   :  { %s2261_s11 = smov 128   ;;  %s2262_s12 = smov 8  }
  0x14   :  { %41 = dma.hbm_to_vmem [thread:$0]  %s2743_s1, 1024, %s36_s25, [#allocation6], %s2261_s11, %s2261_s11, %s2262_s12  }
  0x15   :  { %s2263_s15 = smov [#allocation2]   ;;  %s2140_s19 = scalar_lea.hbm %s2742_s0, 512 }
  0x16   :  { %s23_s16 = sshll.u32 %s2263_s15, 4  ;;  %p2141_p8 = scmp.ne.s32.totalorder %s2742_s0, %s2140_s19  ;;  %s24_s16 = int_to_ptr.vmem [resolvable:$true] %s23_s16 }
  0x17   :  { %p2144_p9 = scmp.lt.u32.totalorder %s2140_s19, %s2742_s0 }
  0x19   :  { %p2146_p10 = pnand %p2144_p9, %p2141_p8 }
  0x1b   :  { %2149 = shalt.err (!%p2146_p10)
}
  0x1c   :  { %s2150_s24 = scalar_lea.vmem %s24_s16, 512  ;;  %p2155_p12 = scmp.lt.s32.totalorder %s24_s16, %s24_s16 }
  0x1d   :  { %p2151_p11 = scmp.ne.s32.totalorder %s24_s16, %s2150_s24  ;;  %p2156_p13 = scmp.lt.s32.totalorder %s2150_s24, %s2150_s24 }
  0x1f   :  { %p2157_p0 = por %p2156_p13, %p2155_p12 }
  0x21   :  { %p2158_p1 = pnand %p2157_p0, %p2151_p11 }
  0x23   :  { %2161 = shalt.err (!%p2158_p1)
}
  0x24   :  { %s2264_s1 = smov 64   ;;  %s2265_s25 = smov 4  }
  0x25   :  { %29 = dma.hbm_to_vmem [thread:$0]  %s2742_s0, 512, %s24_s16, [#allocation3], %s2264_s1, %s2264_s1, %s2265_s25  }
  0x26   :  { %s2266_s28 = smov [#allocation7]   ;;  %s2267_s30 = smov [#allocation8]  }
  0x27   :  { %s47_s29 = sshll.u32 %s2266_s28, 4  ;;  %s61_s8 = sshll.u32 %s2267_s30, 4  ;;  %s48_s29 = int_to_ptr.vmem [resolvable:$true] %s47_s29  ;;  %s2341_s8 = int_to_ptr.vmem [resolvable:$true] %s61_s8 }
  0x28   :  { %s2162_s13 = scalar_lea.hbm %s2744_s2, 512 }
  0x29   :  { %p2163_p2 = scmp.ne.s32.totalorder %s2744_s2, %s2162_s13  ;;  %p2166_p3 = scmp.lt.u32.totalorder %s2162_s13, %s2744_s2 }
  0x2b   :  { %p2168_p4 = pnand %p2166_p3, %p2163_p2 }
  0x2d   :  { %2171 = shalt.err (!%p2168_p4)
}
  0x2e   :  { %s2172_s0 = scalar_lea.vmem %s48_s29, 512  ;;  %p2177_p6 = scmp.lt.s32.totalorder %s48_s29, %s48_s29 }
  0x2f   :  { %p2173_p5 = scmp.ne.s32.totalorder %s48_s29, %s2172_s0  ;;  %p2178_p7 = scmp.lt.s32.totalorder %s2172_s0, %s2172_s0 }
  0x31   :  { %p2179_p8 = por %p2178_p7, %p2177_p6 }
  0x33   :  { %p2180_p9 = pnand %p2179_p8, %p2173_p5 }
  0x35   :  { %2183 = shalt.err (!%p2180_p9)
}
  0x36   :  { %53 = dma.hbm_to_vmem [thread:$0]  %s2744_s2, 512, %s48_s29, [#allocation6], %s2261_s11, %s2261_s11, %s2262_s12  }
  0x37   :  { %s2184_s22 = scalar_lea.hbm %s2746_s4, 512 }
  0x38   :  { %p2185_p10 = scmp.ne.s32.totalorder %s2746_s4, %s2184_s22  ;;  %p2188_p11 = scmp.lt.u32.totalorder %s2184_s22, %s2746_s4 }
  0x3a   :  { %p2190_p12 = pnand %p2188_p11, %p2185_p10 }
  0x3c   :  { %2193 = shalt.err (!%p2190_p12)
}
  0x3d   :  { %s2194_s26 = scalar_lea.vmem %s2341_s8, 512  ;;  %p2199_p0 = scmp.lt.s32.totalorder %s2341_s8, %s2341_s8 }
  0x3e   :  { %p2195_p13 = scmp.ne.s32.totalorder %s2341_s8, %s2194_s26  ;;  %p2200_p1 = scmp.lt.s32.totalorder %s2194_s26, %s2194_s26 }
  0x40   :  { %p2201_p2 = por %p2200_p1, %p2199_p0 }
  0x42   :  { %p2202_p3 = pnand %p2201_p2, %p2195_p13 }
  0x44   :  { %2205 = shalt.err (!%p2202_p3)
}
  0x45   :  { %67 = dma.hbm_to_vmem [thread:$0]  %s2746_s4, 512, %s2341_s8, [#allocation9], %s2261_s11, %s2261_s11, %s2262_s12  }
  0x46   :  { %2250 = dma.done.wait [#allocation3], 512  }
  0x47   :  { %2251 = vsyncadd [#allocation3], 4294966784 }
  0x48   :  { %2252 = dma.done.wait [#allocation6], 1536  }
  0x49   :  { %2253 = vsyncadd [#allocation6], 4294965760 }
  0x4a   :  { %2254 = dma.done.wait [#allocation9], 512  }
  0x4b   :  { %2255 = vsyncadd [#allocation9], 4294966784  ;;  %v2268_v0 = vmov 0.0   ;;  %vm2269_vm0 = vmmov 0   ;;  %v83_v1 = vld [vmem:[#allocation5] sm:$0xff]  ;;  %v84_v2 = vld [vmem:[#allocation5 + $0x8] sm:$0xff] }
  0x4c   :  { %1934 = vmatprep.subr.bf16.mxu0 %v2268_v0  ;;  %1940 = vmatprep.subr.bf16.mxu1 %v2268_v0  ;;  %v85_v3 = vld [vmem:[#allocation5 + $0x10] sm:$0xff]  ;;  %v2384_v4 = vpack.c.bf16 %v84_v2, %v83_v1  ;;  %v86_v5 = vld [vmem:[#allocation5 + $0x18] sm:$0xff]  ;;  %v2106_v7 = vld [vmem:[#allocation2] sm:$0xff]   ;;  %vm108_vm1 = vcmask 130048   ;;  %vm311_vm2 = vcmask 261120   ;;  %s2270_s29 = smov 96  }
  0x4d   :  { %1936 = vmatprep.mubr.msk.bf16.mxu0 %vm2269_vm0, %v2268_v0  ;;  %1942 = vmatprep.mubr.msk.bf16.mxu1 %vm2269_vm0, %v2268_v0  ;;  %v2386_v6 = vpack.c.bf16 %v86_v5, %v85_v3  ;;  %v87_v8 = vld [vmem:[#allocation5 + $0x20] sm:$0xff]  ;;  %v88_v9 = vld [vmem:[#allocation5 + $0x28] sm:$0xff]  ;;  %v89_v12 = vld [vmem:[#allocation5 + $0x30] sm:$0xff] }
  0x4e   :  { %1935 = vmatpush3.bf16.msra.mxu0 %v2384_v4  ;;  %v2389_v10 = vpack.c.bf16 %v88_v9, %v87_v8  ;;  %v2107_v11 = vld [vmem:[#allocation2 + $0x8] sm:$0xff]   ;;  %v90_v13 = vld [vmem:[#allocation5 + $0x38] sm:$0xff]  ;;  %v300_v15 = vld [vmem:[#allocation7] sm:$0xff] }
  0x4f   :  { %1941 = vmatpush3.bf16.msra.mxu1 %v2386_v6  ;;  %1946 = vmatprep.subr.bf16.mxu0 %v2268_v0  ;;  %v2395_v14 = vpack.c.bf16 %v90_v13, %v89_v12  ;;  %v301_v16 = vld [vmem:[#allocation7 + $0x8] sm:$0xff]  ;;  %v2108_v18 = vld [vmem:[#allocation2 + $0x10] sm:$0xff]   ;;  %v2109_v19 = vld [vmem:[#allocation2 + $0x18] sm:$0xff]  }
  0x50   :  { %1952 = vmatprep.subr.bf16.mxu1 %v2268_v0  ;;  %v2048_v17 = vpack.c.bf16 %v301_v16, %v300_v15  ;;  %v302_v20 = vld [vmem:[#allocation7 + $0x10] sm:$0xff]  ;;  %v303_v21 = vld [vmem:[#allocation7 + $0x18] sm:$0xff]  ;;  %v1812_v47 = vld [vmem:[%s2745_s3] ss:$0 sm:$0xff] }
  0x51   :  { %1937 = vmatmul.mubr.msk.bf16.vlgmr.msra.gmra.mrb[0].mxu0 %vm108_vm1, %v2106_v7  ;;  %v2052_v22 = vpack.c.bf16 %v303_v21, %v302_v20  ;;  %v896_v21 = vld [vmem:[#allocation8 + $0x18] sm:$0xff]  ;;  %vm2472_vm3 = vmpackc.low %vm311_vm2, %vm311_vm2 }
  0x52   :  { %1947 = vmatpush3.bf16.msra.mxu0 %v2389_v10  ;;  %1943 = vmatmul.mubr.msk.bf16.vlgmr.msra.gmra.mrb[0].mxu1 %vm108_vm1, %v2107_v11 }
  0x53   :  { %1948 = vmatprep.mubr.msk.bf16.mxu0 %vm2269_vm0, %v2268_v0  ;;  %1953 = vmatpush3.bf16.msra.mxu1 %v2395_v14 }
  0x54   :  { %1954 = vmatprep.mubr.msk.bf16.mxu1 %vm2269_vm0, %v2268_v0  ;;  %2049 = vmatprep.subr.bf16.mxu0 %v2048_v17 }
  0x59   :  { %1949 = vmatmul.mubr.msk.bf16.vlgmr.msra.gmra.mrb[4].mxu0 %vm108_vm1, %v2108_v18  ;;  %v894_v18 = vld [vmem:[#allocation8 + $0x8] sm:$0xff] }
  0x5a   :  { %1955 = vmatmul.mubr.msk.bf16.vlgmr.msra.gmra.mrb[4].mxu1 %vm108_vm1, %v2109_v19  ;;  %2051 = vmatpush3.bf16.msra.mxu0 %v2048_v17  ;;  %v893_v17 = vld [vmem:[#allocation8] sm:$0xff]  ;;  %v895_v19 = vld [vmem:[#allocation8 + $0x10] sm:$0xff] }
  0x5b   :  { %1982 = vmatprep.mubr.msk.f32.mxu1 %vm2269_vm0, %v2268_v0  ;;  %2053 = vmatprep.subr.bf16.mxu0 %v2052_v22  ;;  %v2068_v20 = vpack.c.bf16 %v894_v18, %v893_v17 }
  0x5e   :  { %2055 = vmatpush3.bf16.msra.mxu0 %v2052_v22  ;;  %v2072_v22 = vpack.c.bf16 %v896_v21, %v895_v19 }
  0x5f   :  { %2069 = vmatprep.subr.bf16.mxu0 %v2068_v20 }
 0x124   :  { %v146_v23 = vpop.f32.mrb[0].mxu0 }
 0x125   :  { %v147_v24 = vadd.f32 %v146_v23, %v83_v1  ;;  %v1938_v25 = vpop.f32.mrb[1].mxu0  ;;  %v195_v26 = vpop.f32.mrb[0].mxu1 }
 0x126   :  { %v149_v27 = vpop.f32.mrb[2].mxu0  ;;  %v196_v28 = vadd.f32 %v195_v26, %v85_v3  ;;  %v1944_v29 = vpop.f32.mrb[1].mxu1  ;;  %v2271_v3 = vmov 0.0|0.0  }
 0x127   :  { %v150_v30 = vadd.f32 %v149_v27, %v84_v2  ;;  %v1939_v31 = vpop.f32.mrb[3].mxu0  ;;  %v198_v32 = vpop.f32.mrb[2].mxu1  ;;  %1966 = vmatprep.mubr.msk.f32.mxu0 %vm311_vm2, %v147_v24  ;;  %2056 = vmatprep.subr.bf16.mxu1 %v2271_v3 }
 0x128   :  { %v1945_v33 = vpop.f32.mrb[3].mxu1  ;;  %v199_v34 = vadd.f32 %v198_v32, %v86_v5  ;;  %2058 = vmatpush3.bf16.msra.mxu1 %v2384_v4 }
 0x129   :  { %1967 = vmatmul.mubr.msk.f32.vlgmr.msra.gmra.mrb[8].mxu0 %vm311_vm2, %v150_v30  ;;  %2059 = vmatprep.subr.bf16.mxu1 %v2271_v3  ;;  %v1825_v33 = vld [vmem:[%s2747_s5] ss:$0 sm:$0xff]  ;;  %s2272_s5 = smov [#allocation11]  }
 0x12a   :  { %1969 = vmatprep.mubr.msk.f32.mxu0 %vm311_vm2, %v196_v28  ;;  %2071 = vmatpush3.bf16.msra.mxu0 %v2068_v20  ;;  %s1786_s8 = sshll.u32 %s2272_s5, 4  ;;  %s1787_s8 = int_to_ptr.vmem [resolvable:$true] %s1786_s8 }
 0x12b   :  { %2073 = vmatprep.subr.bf16.mxu0 %v2072_v22  ;;  %s2206_s9 = scalar_lea.vmem %s1787_s8, 512  ;;  %p2211_p5 = scmp.lt.s32.totalorder %s1787_s8, %s1787_s8 }
 0x12c   :  { %v244_v35 = vpop.f32.mrb[4].mxu0  ;;  %p2207_p4 = scmp.ne.s32.totalorder %s1787_s8, %s2206_s9  ;;  %p2212_p6 = scmp.lt.s32.totalorder %s2206_s9, %s2206_s9 }
 0x12d   :  { %v245_v36 = vadd.f32 %v244_v35, %v87_v8  ;;  %v1950_v37 = vpop.f32.mrb[5].mxu0  ;;  %1970 = vmatmul.mubr.msk.f32.gmra.mrb[10].mxu0 %vm311_vm2, %v199_v34  ;;  %v293_v38 = vpop.f32.mrb[4].mxu1 }
 0x12e   :  { %v247_v39 = vpop.f32.mrb[6].mxu0  ;;  %v294_v40 = vadd.f32 %v293_v38, %v89_v12  ;;  %v1956_v41 = vpop.f32.mrb[5].mxu1  ;;  %2075 = vmatpush3.bf16.msra.mxu0 %v2072_v22  ;;  %p2213_p7 = por %p2212_p6, %p2211_p5 }
 0x12f   :  { %v248_v42 = vadd.f32 %v247_v39, %v88_v9  ;;  %v1951_v43 = vpop.f32.mrb[7].mxu0  ;;  %1972 = vmatprep.mubr.msk.f32.mxu0 %vm311_vm2, %v245_v36  ;;  %v296_v44 = vpop.f32.mrb[6].mxu1  ;;  %2080 = vmatprep.subr.bf16.mxu0 %v2271_v3 }
 0x130   :  { %v1957_v45 = vpop.f32.mrb[7].mxu1  ;;  %v297_v46 = vadd.f32 %v296_v44, %v90_v13  ;;  %p2214_p8 = pnand %p2213_p7, %p2207_p4 }
 0x131   :  { %1973 = vmatmul.mubr.msk.f32.gmra.mrb[12].mxu0 %vm311_vm2, %v248_v42 }
 0x132   :  { %1975 = vmatprep.mubr.msk.f32.mxu0 %vm311_vm2, %v294_v40 }
 0x135   :  { %1976 = vmatmul.mubr.msk.f32.gmra.mrb[14].mxu0 %vm311_vm2, %v297_v46 }
 0x1fc   :  { %v1968_v48 = vpop.f32.mrb[8].mxu0 }
 0x1fd   :  { %v2419_v49 = vadd.f32 %v1968_v48, %v1812_v47  ;;  %v402_v50 = vpop.f32.mrb[9].mxu0 }
 0x1fe   :  { %v2421_v51 = vadd.f32 %v1812_v47, %v402_v50 }
 0x200   :  { %v2077_v52 = vpack.c.bf16 %v2419_v49, %v2421_v51  ;;  %v1971_v53 = vpop.f32.mrb[10].mxu0  ;;  %443 = vrot.lane.b32.xlu0 %v2421_v51, %s2270_s29 }
 0x201   :  { %v2426_v54 = vadd.f32 %v1971_v53, %v1812_v47  ;;  %v412_v55 = vpop.f32.mrb[11].mxu0 }
 0x202   :  { %v2428_v56 = vadd.f32 %v1812_v47, %v412_v55 }
 0x204   :  { %v2081_v57 = vpack.c.bf16 %v2426_v54, %v2428_v56  ;;  %v1974_v58 = vpop.f32.mrb[12].mxu0  ;;  %556 = vrot.lane.b32.xlu1 %v2428_v56, %s2270_s29  ;;  %445 = vrot.lane.b32.xlu0 %v2419_v49, %s2270_s29 }
 0x205   :  { %v2434_v59 = vadd.f32 %v1974_v58, %v1812_v47  ;;  %v422_v60 = vpop.f32.mrb[13].mxu0 }
 0x206   :  { %v2436_v61 = vadd.f32 %v1812_v47, %v422_v60 }
 0x208   :  { %v2085_v62 = vpack.c.bf16 %v2434_v59, %v2436_v61  ;;  %558 = vrot.lane.b32.xlu1 %v2426_v54, %s2270_s29  ;;  %669 = vrot.lane.b32.xlu0 %v2436_v61, %s2270_s29  ;;  %v1977_v63 = vpop.f32.mrb[14].mxu0 }
 0x209   :  { %v2442_v1 = vadd.f32 %v1977_v63, %v1812_v47  ;;  %v432_v2 = vpop.f32.mrb[15].mxu0 }
 0x20a   :  { %v2445_v5 = vadd.f32 %v1812_v47, %v432_v2 }
 0x20c   :  { %v2089_v7 = vpack.c.bf16 %v2442_v1, %v2445_v5  ;;  %671 = vrot.lane.b32.xlu1 %v2434_v59, %s2270_s29  ;;  %782 = vrot.lane.b32.xlu0 %v2445_v5, %s2270_s29 }
 0x210   :  { %784 = vrot.lane.b32.xlu1 %v2442_v1, %s2270_s29 }
 0x272   :  { %v444_v8 = vpop.permute.xlu0 %443 }
 0x273   :  { %449 = vxpose.xlu0.b32.start [1/2] (short) (narrow) %v444_v8, 8 }
 0x276   :  { %v557_v9 = vpop.permute.xlu1 %556  ;;  %v446_v11 = vpop.permute.xlu0 %445 }
 0x277   :  { %562 = vxpose.xlu1.b32.start [1/2] (short) (narrow) %v557_v9, 8  ;;  %450 = vxpose.xlu0.b32.end [2/2] (short) (narrow) %v446_v11, 8 }
 0x27a   :  { %v559_v12 = vpop.permute.xlu1 %558  ;;  %v670_v13 = vpop.permute.xlu0 %669 }
 0x27b   :  { %563 = vxpose.xlu1.b32.end [2/2] (short) (narrow) %v559_v12, 8  ;;  %675 = vxpose.xlu0.b32.start [1/2] (short) (narrow) %v670_v13, 8 }
 0x27e   :  { %v672_v4 = vpop.permute.xlu1 %671  ;;  %v783_v15 = vpop.permute.xlu0 %782 }
 0x27f   :  { %676 = vxpose.xlu0.b32.end [2/2] (short) (narrow) %v672_v4, 8 }
 0x282   :  { %v785_v16 = vpop.permute.xlu1 %784 }
 0x283   :  { %788 = vxpose.xlu0.b32.start [1/2] (short) (narrow) %v783_v15, 8 }
 0x287   :  { %789 = vxpose.xlu0.b32.end [2/2] (short) (narrow) %v785_v16, 8 }
 0x2f3   :  { %v465_v23 = vpop.trf.xlu0 }
 0x2f4   :  { %1983 = vmatmul.mubr.msk.f32.vlgmr.msra.gmra.mrb[8].mxu1 %vm108_vm1, %v465_v23 }
 0x2f5   :  { %2061 = vmatpush3.bf16.msra.mxu1 %v2386_v6  ;;  %1989 = vmatprep.mubr.msk.f32.mxu1 %vm2269_vm0, %v2268_v0 }
 0x2f6   :  { %2062 = vmatprep.subr.bf16.mxu1 %v2271_v3 }
 0x2f7   :  { %v578_v24 = vpop.trf.xlu1 }
 0x2f8   :  { %1990 = vmatmul.mubr.msk.f32.vlgmr.msra.gmra.mrb[10].mxu1 %vm108_vm1, %v578_v24 }
 0x2f9   :  { %2064 = vmatpush3.bf16.msra.mxu1 %v2389_v10  ;;  %1996 = vmatprep.mubr.msk.f32.mxu1 %vm2269_vm0, %v2268_v0 }
 0x2fa   :  { %2065 = vmatprep.subr.bf16.mxu1 %v2271_v3 }
 0x2fb   :  { %v691_v25 = vpop.trf.xlu0 }
 0x2fc   :  { %1997 = vmatmul.mubr.msk.f32.vlgmr.msra.gmra.mrb[12].mxu1 %vm108_vm1, %v691_v25 }
 0x2fd   :  { %2067 = vmatpush3.bf16.msra.mxu1 %v2395_v14  ;;  %2003 = vmatprep.mubr.msk.f32.mxu1 %vm2269_vm0, %v2268_v0 }
 0x2fe   :  { %2076 = vmatprep.subr.bf16.mxu1 %v2271_v3 }
 0x303   :  { %v804_v6 = vpop.trf.xlu0 }
 0x304   :  { %2004 = vmatmul.mubr.msk.f32.vlgmr.msra.gmra.mrb[14].mxu1 %vm108_vm1, %v804_v6 }
 0x305   :  { %2024 = vmatprep.mubr.msk.f32.mxu1 %vm2269_vm0, %v2268_v0 }
 0x306   :  { %2079 = vmatpush3.bf16.xpose.msk.msra.mxu1 %vm2472_vm3, %v2077_v52 }
 0x307   :  { %2084 = vmatprep.subr.bf16.mxu1 %v2271_v3 }
 0x3c7   :  { %v550_v14 = vpop.f32.mrb[8].mxu1 }
 0x3c8   :  { %v1984_v26 = vpop.f32.mrb[9].mxu1  ;;  %2014 = vmatprep.mubr.msk.f32.mxu0 %vm311_vm2, %v550_v14 }
 0x3cb   :  { %v663_v27 = vpop.f32.mrb[10].mxu1 }
 0x3cc   :  { %2015 = vmatmul.mubr.msk.f32.vlgmr.msra.gmra.mrb[16].mxu0 %vm311_vm2, %v663_v27  ;;  %v1991_v28 = vpop.f32.mrb[11].mxu1 }
 0x3cd   :  { %2083 = vmatpush3.bf16.xpose.msk.msra.mxu0 %vm2472_vm3, %v2081_v57 }
 0x3ce   :  { %2088 = vmatprep.subr.bf16.mxu0 %v2271_v3 }
 0x3cf   :  { %v776_v29 = vpop.f32.mrb[12].mxu1 }
 0x3d0   :  { %v1998_v30 = vpop.f32.mrb[13].mxu1  ;;  %2017 = vmatprep.mubr.msk.f32.mxu0 %vm311_vm2, %v776_v29 }
 0x3d7   :  { %v889_v31 = vpop.f32.mrb[14].mxu1 }
 0x3d8   :  { %v2005_v32 = vpop.f32.mrb[15].mxu1  ;;  %2018 = vmatmul.mubr.msk.f32.gmra.mrb[18].mxu0 %vm311_vm2, %v889_v31 }
 0x3d9   :  { %2031 = vmatprep.mubr.msk.f32.mxu0 %vm2269_vm0, %v2268_v0 }
 0x49f   :  { %v2016_v34 = vpop.f32.mrb[16].mxu0 }
 0x4a0   :  { %v988_v35 = vadd.f32 %v2016_v34, %v1825_v33  ;;  %v982_v36 = vpop.f32.mrb[17].mxu0 }
 0x4a1   :  { %v983_v37 = vadd.f32 %v1825_v33, %v982_v36 }
 0x4a2   :  { %1766 = vst.msk [vmem:[#allocation11 + $0x8] sm:$0xff] %vm311_vm2, %v988_v35  ;;  %2032 = vmatmul.mubr.msk.f32.vlgmr.msra.gmra.mrb[20].mxu0 %vm311_vm2, %v988_v35 }
 0x4a3   :  { %1765 = vst.msk [vmem:[#allocation11] sm:$0xff] %vm311_vm2, %v983_v37  ;;  %2091 = vmatpush3.bf16.xpose.msk.msra.mxu0 %vm2472_vm3, %v2089_v7  ;;  %2025 = vmatmul.mubr.msk.f32.vlgmr.msra.gmra.mrb[16].mxu1 %vm311_vm2, %v983_v37 }
 0x4a4   :  { %2087 = vmatpush3.bf16.xpose.msk.msra.mxu1 %vm2472_vm3, %v2085_v62  ;;  %2045 = vmatprep.mubr.msk.f32.mxu0 %vm2269_vm0, %v2268_v0 }
 0x4a5   :  { %2038 = vmatprep.mubr.msk.f32.mxu1 %vm2269_vm0, %v2268_v0 }
 0x4ab   :  { %v2019_v38 = vpop.f32.mrb[18].mxu0 }
 0x4ac   :  { %v998_v39 = vadd.f32 %v2019_v38, %v1825_v33  ;;  %v992_v40 = vpop.f32.mrb[19].mxu0 }
 0x4ad   :  { %v993_v41 = vadd.f32 %v1825_v33, %v992_v40 }
 0x4ae   :  { %1768 = vst.msk [vmem:[#allocation11 + $0x18] sm:$0xff] %vm311_vm2, %v998_v39  ;;  %2046 = vmatmul.mubr.msk.f32.vlgmr.msra.gmra.mrb[22].mxu0 %vm311_vm2, %v998_v39 }
 0x4af   :  { %1767 = vst.msk [vmem:[#allocation11 + $0x10] sm:$0xff] %vm311_vm2, %v993_v41  ;;  %2039 = vmatmul.mubr.msk.f32.vlgmr.msra.gmra.mrb[18].mxu1 %vm311_vm2, %v993_v41 }
 0x4b0   :  { %2217 = shalt.err (!%p2214_p8)
}
 0x4b1   :  { %s2218_s14 = scalar_lea.hbm %s2749_s7, 512 }
 0x4b2   :  { %p2219_p9 = scmp.ne.s32.totalorder %s2749_s7, %s2218_s14  ;;  %p2222_p10 = scmp.lt.u32.totalorder %s2218_s14, %s2749_s7 }
 0x4b4   :  { %p2224_p11 = pnand %p2222_p10, %p2219_p9 }
 0x4b6   :  { %2227 = shalt.err (!%p2224_p11)
}
 0x4b7   :  { %1792 = dma.vmem_to_hbm [thread:$0]  %s1787_s8, 512, %s2749_s7, [#allocation12], %s2261_s11, %s2261_s11, %s2262_s12   ;;  %v1341_v51 = vlaneseq }
 0x4b8   :  { %s2273_s7 = smov [#allocation10]  }
 0x4b9   :  { %v1342_v56 = vshrl.u32 %v1341_v51, 7  ;;  %s1774_s20 = sshll.u32 %s2273_s7, 4  ;;  %s1775_s20 = int_to_ptr.vmem [resolvable:$true] %s1774_s20 }
 0x4ba   :  { %s2228_s21 = scalar_lea.vmem %s1775_s20, 512  ;;  %p2233_p13 = scmp.lt.s32.totalorder %s1775_s20, %s1775_s20 }
 0x4bb   :  { %v2539_v62 = vsub.s32 0, %v1342_v56  ;;  %v2541_v63 = vsub.s32 1, %v1342_v56  ;;  %v2543_v1 = vsub.s32 2, %v1342_v56  ;;  %v2546_v8 = vsub.s32 3, %v1342_v56  ;;  %p2229_p12 = scmp.ne.s32.totalorder %s1775_s20, %s2228_s21  ;;  %p2234_p0 = scmp.lt.s32.totalorder %s2228_s21, %s2228_s21 }
 0x4bc   :  { %v2548_v9 = vsub.s32 4, %v1342_v56  ;;  %v2553_v15 = vsub.s32 5, %v1342_v56  ;;  %v2557_v18 = vsub.s32 6, %v1342_v56  ;;  %v2559_v19 = vsub.s32 7, %v1342_v56 }
 0x4bd   :  { %p2235_p1 = por %p2234_p0, %p2233_p13 }
 0x4bf   :  { %p2236_p2 = pnand %p2235_p1, %p2229_p12 }
 0x575   :  { %v1151_v42 = vpop.f32.mrb[20].mxu0 }
 0x576   :  { %v1316_v43 = vsel %vm108_vm1, %v1151_v42, -inf  ;;  %v1074_v44 = vpop.f32.mrb[16].mxu1  ;;  %v2033_v45 = vpop.f32.mrb[21].mxu0 }
 0x577   :  { %v1317_v46 = vrot.slane %v1316_v43, 4  ;;  %v1309_v47 = vsel %vm108_vm1, %v1074_v44, -inf  ;;  %v2026_v48 = vpop.f32.mrb[17].mxu1 }
 0x578   :  { %v1310_v49 = vrot.slane %v1309_v47, 4 }
 0x579   :  { %v1318_v50 = vmax.f32 %v1316_v43, %v1317_v46 }
 0x57a   :  { %v1311_v52 = vmax.f32 %v1309_v47, %v1310_v49 }
 0x57b   :  { %v1319_v53 = vrot.slane %v1318_v50, 2 }
 0x57c   :  { %v1312_v54 = vrot.slane %v1311_v52, 2 }
 0x57d   :  { %v1320_v55 = vmax.f32 %v1318_v50, %v1319_v53 }
 0x57e   :  { %v1313_v57 = vmax.f32 %v1311_v52, %v1312_v54 }
 0x57f   :  { %v1321_v58 = vrot.slane %v1320_v55, 1 }
 0x580   :  { %v1314_v59 = vrot.slane %v1313_v57, 1 }
 0x581   :  { %v1322_v60 = vmax.f32 %v1320_v55, %v1321_v58  ;;  %v1305_v61 = vpop.f32.mrb[22].mxu0 }
 0x582   :  { %v1315_v2 = vmax.f32 %v1313_v57, %v1314_v59  ;;  %v1330_v3 = vsel %vm108_vm1, %v1305_v61, -inf  ;;  %v1228_v5 = vpop.f32.mrb[18].mxu1  ;;  %v2047_v7 = vpop.f32.mrb[23].mxu0 }
 0x583   :  { %v2550_v11 = vsub.f32 %v1151_v42, %v1322_v60  ;;  %v1331_v12 = vrot.slane %v1330_v3, 4  ;;  %v1323_v13 = vsel %vm108_vm1, %v1228_v5, -inf  ;;  %v2040_v4 = vpop.f32.mrb[19].mxu1 }
 0x584   :  { %v2555_v16 = vsub.f32 %v1074_v44, %v1315_v2  ;;  %v1324_v17 = vrot.slane %v1323_v13, 4 }
 0x585   :  { %v1332_v20 = vmax.f32 %v1330_v3, %v1331_v12  ;;  %v1348_v21 = vrot.slane %v2550_v11, %v2539_v62  ;;  %v1388_v22 = vrot.slane %v2550_v11, %v2541_v63  ;;  %v1428_v23 = vrot.slane %v2550_v11, %v2543_v1 }
 0x586   :  { %v1325_v24 = vmax.f32 %v1323_v13, %v1324_v17  ;;  %v1344_v25 = vrot.slane %v2555_v16, %v2539_v62  ;;  %v1384_v6 = vrot.slane %v2555_v16, %v2541_v63  ;;  %v1424_v10 = vrot.slane %v2555_v16, %v2543_v1 }
 0x587   :  { %v1333_v14 = vrot.slane %v1332_v20, 2  ;;  %vm1358_vm4 = vcmp.ge.f32.partialorder %v1348_v21, %v2550_v11  ;;  %vm1398_vm5 = vcmp.ge.f32.partialorder %v1388_v22, %v2550_v11  ;;  %vm1438_vm6 = vcmp.ge.f32.partialorder %v1428_v23, %v2550_v11 }
 0x588   :  { %v1326_v26 = vrot.slane %v1325_v24, 2  ;;  %vm1357_vm7 = vcmp.ge.f32.partialorder %v1344_v25, %v2555_v16  ;;  %v1843_v27 = vsel %vm1358_vm4, 1.0, %v2268_v0  ;;  %vm1397_vm8 = vcmp.ge.f32.partialorder %v1384_v6, %v2555_v16 }
 0x589   :  { %v1334_v28 = vmax.f32 %v1332_v20, %v1333_v14  ;;  %v1842_v29 = vsel %vm1357_vm7, 1.0, %v2268_v0  ;;  %v1374_v30 = vmul.f32 %v1843_v27, %v1348_v21  ;;  %v1846_v31 = vsel %vm1397_vm8, 1.0, %v2268_v0 }
 0x58a   :  { %v1327_v32 = vmax.f32 %v1325_v24, %v1326_v26  ;;  %v1373_v33 = vmul.f32 %v1842_v29, %v1344_v25  ;;  %v1847_v34 = vsel %vm1398_vm5, 1.0, %v2268_v0  ;;  %v1409_v35 = vadd.f32 %v1846_v31, %v1842_v29 }
 0x58b   :  { %v1335_v36 = vrot.slane %v1334_v28, 1  ;;  %v1410_v37 = vadd.f32 %v1847_v34, %v1843_v27  ;;  %v1413_v38 = vmul.f32 %v1846_v31, %v1384_v6  ;;  %v1414_v39 = vmul.f32 %v1847_v34, %v1388_v22 }
 0x58c   :  { %v1328_v40 = vrot.slane %v1327_v32, 1  ;;  %vm1437_vm9 = vcmp.ge.f32.partialorder %v1424_v10, %v2555_v16  ;;  %v1851_v41 = vsel %vm1438_vm6, 1.0, %v2268_v0  ;;  %v1464_v42 = vrot.slane %v2555_v16, %v2546_v8 }
 0x58d   :  { %v1336_v43 = vmax.f32 %v1334_v28, %v1335_v36  ;;  %v1417_v44 = vadd.f32 %v1413_v38, %v1373_v33  ;;  %v1418_v45 = vadd.f32 %v1414_v39, %v1374_v30  ;;  %v1850_v46 = vsel %vm1437_vm9, 1.0, %v2268_v0 }
 0x58e   :  { %v1329_v47 = vmax.f32 %v1327_v32, %v1328_v40  ;;  %v1449_v48 = vadd.f32 %v1850_v46, %v1409_v35  ;;  %v1450_v49 = vadd.f32 %v1851_v41, %v1410_v37  ;;  %v1453_v50 = vmul.f32 %v1850_v46, %v1424_v10 }
 0x58f   :  { %v2589_v51 = vsub.f32 %v1305_v61, %v1336_v43  ;;  %v1454_v52 = vmul.f32 %v1851_v41, %v1428_v23  ;;  %v1468_v53 = vrot.slane %v2550_v11, %v2546_v8  ;;  %vm1477_vm10 = vcmp.ge.f32.partialorder %v1464_v42, %v2555_v16 }
 0x590   :  { %v2594_v54 = vsub.f32 %v1228_v5, %v1329_v47  ;;  %v1457_v55 = vadd.f32 %v1453_v50, %v1417_v44  ;;  %v1854_v56 = vsel %vm1477_vm10, 1.0, %v2268_v0  ;;  %v2599_v57 = vrot.slane %v2555_v16, %v2548_v9 }
 0x591   :  { %v1356_v58 = vrot.slane %v2589_v51, %v2539_v62  ;;  %v1396_v59 = vrot.slane %v2589_v51, %v2541_v63  ;;  %v1436_v60 = vrot.slane %v2589_v51, %v2543_v1  ;;  %v1458_v61 = vadd.f32 %v1454_v52, %v1418_v45 }
 0x592   :  { %v1352_v2 = vrot.slane %v2594_v54, %v2539_v62  ;;  %v1392_v3 = vrot.slane %v2594_v54, %v2541_v63  ;;  %v1432_v5 = vrot.slane %v2594_v54, %v2543_v1  ;;  %v1472_v7 = vrot.slane %v2594_v54, %v2546_v8 }
 0x593   :  { %vm1360_vm11 = vcmp.ge.f32.partialorder %v1356_v58, %v2589_v51  ;;  %vm1400_vm12 = vcmp.ge.f32.partialorder %v1396_v59, %v2589_v51  ;;  %vm1440_vm13 = vcmp.ge.f32.partialorder %v1436_v60, %v2589_v51  ;;  %v1476_v12 = vrot.slane %v2589_v51, %v2546_v8 }
 0x594   :  { %vm1359_vm14 = vcmp.ge.f32.partialorder %v1352_v2, %v2594_v54  ;;  %v1845_v62 = vsel %vm1360_vm11, 1.0, %v2268_v0  ;;  %vm1399_vm15 = vcmp.ge.f32.partialorder %v1392_v3, %v2594_v54  ;;  %v1849_v63 = vsel %vm1400_vm12, 1.0, %v2268_v0 }
 0x595   :  { %v1844_v1 = vsel %vm1359_vm14, 1.0, %v2268_v0  ;;  %v1376_v13 = vmul.f32 %v1845_v62, %v1356_v58  ;;  %v1848_v4 = vsel %vm1399_vm15, 1.0, %v2268_v0  ;;  %v1412_v17 = vadd.f32 %v1849_v63, %v1845_v62 }
 0x596   :  { %v1375_v20 = vmul.f32 %v1844_v1, %v1352_v2  ;;  %v1411_v21 = vadd.f32 %v1848_v4, %v1844_v1  ;;  %v1415_v22 = vmul.f32 %v1848_v4, %v1392_v3  ;;  %v1416_v23 = vmul.f32 %v1849_v63, %v1396_v59 }
 0x597   :  { %vm1439_vm0 = vcmp.ge.f32.partialorder %v1432_v5, %v2594_v54  ;;  %v1853_v8 = vsel %vm1440_vm13, 1.0, %v2268_v0  ;;  %vm1478_vm2 = vcmp.ge.f32.partialorder %v1468_v53, %v2550_v11  ;;  %vm1479_vm3 = vcmp.ge.f32.partialorder %v1472_v7, %v2594_v54 }
 0x598   :  { %v1419_v24 = vadd.f32 %v1415_v22, %v1375_v20  ;;  %v1420_v25 = vadd.f32 %v1416_v23, %v1376_v13  ;;  %v1852_v6 = vsel %vm1439_vm0, 1.0, %v2268_v0  ;;  %v1452_v10 = vadd.f32 %v1853_v8, %v1412_v17 }
 0x599   :  { %v1451_v14 = vadd.f32 %v1852_v6, %v1411_v21  ;;  %v1455_v26 = vmul.f32 %v1852_v6, %v1432_v5  ;;  %v1456_v27 = vmul.f32 %v1853_v8, %v1436_v60  ;;  %vm1480_vm4 = vcmp.ge.f32.partialorder %v1476_v12, %v2589_v51 }
 0x59a   :  { %v1855_v28 = vsel %vm1478_vm2, 1.0, %v2268_v0  ;;  %v1856_v29 = vsel %vm1479_vm3, 1.0, %v2268_v0  ;;  %v1857_v30 = vsel %vm1480_vm4, 1.0, %v2268_v0  ;;  %v1489_v31 = vadd.f32 %v1854_v56, %v1449_v48 }
 0x59b   :  { %v1459_v32 = vadd.f32 %v1455_v26, %v1419_v24  ;;  %v1460_v33 = vadd.f32 %v1456_v27, %v1420_v25  ;;  %v1490_v34 = vadd.f32 %v1855_v28, %v1450_v49  ;;  %v1491_v35 = vadd.f32 %v1856_v29, %v1451_v14 }
 0x59c   :  { %v1492_v36 = vadd.f32 %v1857_v30, %v1452_v10  ;;  %v1493_v37 = vmul.f32 %v1854_v56, %v1464_v42  ;;  %v1494_v38 = vmul.f32 %v1855_v28, %v1468_v53  ;;  %v1495_v39 = vmul.f32 %v1856_v29, %v1472_v7 }
 0x59d   :  { %v1496_v40 = vmul.f32 %v1857_v30, %v1476_v12  ;;  %v1508_v41 = vrot.slane %v2550_v11, %v2548_v9  ;;  %v1512_v43 = vrot.slane %v2594_v54, %v2548_v9  ;;  %v1516_v44 = vrot.slane %v2589_v51, %v2548_v9 }
 0x59e   :  { %v1497_v45 = vadd.f32 %v1493_v37, %v1457_v55  ;;  %v1498_v46 = vadd.f32 %v1494_v38, %v1458_v61  ;;  %v1499_v47 = vadd.f32 %v1495_v39, %v1459_v32  ;;  %vm1517_vm5 = vcmp.ge.f32.partialorder %v2599_v57, %v2555_v16 }
 0x59f   :  { %v1500_v48 = vadd.f32 %v1496_v40, %v1460_v33  ;;  %vm1518_vm6 = vcmp.ge.f32.partialorder %v1508_v41, %v2550_v11  ;;  %vm1519_vm7 = vcmp.ge.f32.partialorder %v1512_v43, %v2594_v54  ;;  %vm1520_vm8 = vcmp.ge.f32.partialorder %v1516_v44, %v2589_v51 }
 0x5a0   :  { %v1858_v42 = vsel %vm1517_vm5, 1.0, %v2268_v0  ;;  %v1859_v49 = vsel %vm1518_vm6, 1.0, %v2268_v0  ;;  %v1860_v50 = vsel %vm1519_vm7, 1.0, %v2268_v0  ;;  %v1861_v9 = vsel %vm1520_vm8, 1.0, %v2268_v0 }
 0x5a1   :  { %v1529_v52 = vadd.f32 %v1858_v42, %v1489_v31  ;;  %v1530_v53 = vadd.f32 %v1859_v49, %v1490_v34  ;;  %v1531_v55 = vadd.f32 %v1860_v50, %v1491_v35  ;;  %v1532_v56 = vadd.f32 %v1861_v9, %v1492_v36 }
 0x5a2   :  { %v1533_v58 = vmul.f32 %v1858_v42, %v2599_v57  ;;  %v1534_v59 = vmul.f32 %v1859_v49, %v1508_v41  ;;  %v1535_v60 = vmul.f32 %v1860_v50, %v1512_v43  ;;  %v1536_v61 = vmul.f32 %v1861_v9, %v1516_v44 }
 0x5a3   :  { %v1544_v2 = vrot.slane %v2555_v16, %v2553_v15  ;;  %v1548_v3 = vrot.slane %v2550_v11, %v2553_v15  ;;  %v1552_v5 = vrot.slane %v2594_v54, %v2553_v15  ;;  %v1556_v7 = vrot.slane %v2589_v51, %v2553_v15 }
 0x5a4   :  { %v1537_v12 = vadd.f32 %v1533_v58, %v1497_v45  ;;  %v1538_v62 = vadd.f32 %v1534_v59, %v1498_v46  ;;  %v1539_v63 = vadd.f32 %v1535_v60, %v1499_v47  ;;  %v1540_v1 = vadd.f32 %v1536_v61, %v1500_v48 }
 0x5a5   :  { %vm1557_vm9 = vcmp.ge.f32.partialorder %v1544_v2, %v2555_v16  ;;  %vm1558_vm10 = vcmp.ge.f32.partialorder %v1548_v3, %v2550_v11  ;;  %vm1559_vm11 = vcmp.ge.f32.partialorder %v1552_v5, %v2594_v54  ;;  %vm1560_vm12 = vcmp.ge.f32.partialorder %v1556_v7, %v2589_v51 }
 0x5a6   :  { %v1862_v57 = vsel %vm1557_vm9, 1.0, %v2268_v0  ;;  %v1863_v13 = vsel %vm1558_vm10, 1.0, %v2268_v0  ;;  %v1864_v4 = vsel %vm1559_vm11, 1.0, %v2268_v0  ;;  %v1865_v15 = vsel %vm1560_vm12, 1.0, %v2268_v0 }
 0x5a7   :  { %v1569_v17 = vadd.f32 %v1862_v57, %v1529_v52  ;;  %v1570_v20 = vadd.f32 %v1863_v13, %v1530_v53  ;;  %v1571_v21 = vadd.f32 %v1864_v4, %v1531_v55  ;;  %v1572_v22 = vadd.f32 %v1865_v15, %v1532_v56 }
 0x5a8   :  { %v1573_v23 = vmul.f32 %v1862_v57, %v1544_v2  ;;  %v1574_v8 = vmul.f32 %v1863_v13, %v1548_v3  ;;  %v1575_v24 = vmul.f32 %v1864_v4, %v1552_v5  ;;  %v1576_v25 = vmul.f32 %v1865_v15, %v1556_v7 }
 0x5a9   :  { %v1584_v6 = vrot.slane %v2555_v16, %v2557_v18  ;;  %v1588_v10 = vrot.slane %v2550_v11, %v2557_v18  ;;  %v1592_v14 = vrot.slane %v2594_v54, %v2557_v18  ;;  %v1596_v26 = vrot.slane %v2589_v51, %v2557_v18 }
 0x5aa   :  { %v1577_v27 = vadd.f32 %v1573_v23, %v1537_v12  ;;  %v1578_v28 = vadd.f32 %v1574_v8, %v1538_v62  ;;  %v1579_v29 = vadd.f32 %v1575_v24, %v1539_v63  ;;  %v1580_v30 = vadd.f32 %v1576_v25, %v1540_v1 }
 0x5ab   :  { %vm1597_vm13 = vcmp.ge.f32.partialorder %v1584_v6, %v2555_v16  ;;  %vm1598_vm14 = vcmp.ge.f32.partialorder %v1588_v10, %v2550_v11  ;;  %vm1599_vm15 = vcmp.ge.f32.partialorder %v1592_v14, %v2594_v54  ;;  %vm1600_vm0 = vcmp.ge.f32.partialorder %v1596_v26, %v2589_v51 }
 0x5ac   :  { %v1866_v31 = vsel %vm1597_vm13, 1.0, %v2268_v0  ;;  %v1867_v32 = vsel %vm1598_vm14, 1.0, %v2268_v0  ;;  %v1868_v33 = vsel %vm1599_vm15, 1.0, %v2268_v0  ;;  %v1869_v18 = vsel %vm1600_vm0, 1.0, %v2268_v0 }
 0x5ad   :  { %v1609_v34 = vadd.f32 %v1866_v31, %v1569_v17  ;;  %v1610_v35 = vadd.f32 %v1867_v32, %v1570_v20  ;;  %v1611_v36 = vadd.f32 %v1868_v33, %v1571_v21  ;;  %v1612_v37 = vadd.f32 %v1869_v18, %v1572_v22 }
 0x5ae   :  { %v1613_v38 = vmul.f32 %v1866_v31, %v1584_v6  ;;  %v1614_v39 = vmul.f32 %v1867_v32, %v1588_v10  ;;  %v1615_v40 = vmul.f32 %v1868_v33, %v1592_v14  ;;  %v1616_v41 = vmul.f32 %v1869_v18, %v1596_v26 }
 0x5af   :  { %v1624_v43 = vrot.slane %v2555_v16, %v2559_v19  ;;  %v1628_v44 = vrot.slane %v2550_v11, %v2559_v19  ;;  %v1632_v45 = vrot.slane %v2594_v54, %v2559_v19  ;;  %v1636_v46 = vrot.slane %v2589_v51, %v2559_v19 }
 0x5b0   :  { %v1617_v47 = vadd.f32 %v1613_v38, %v1577_v27  ;;  %v1618_v48 = vadd.f32 %v1614_v39, %v1578_v28  ;;  %v1619_v42 = vadd.f32 %v1615_v40, %v1579_v29  ;;  %v1620_v49 = vadd.f32 %v1616_v41, %v1580_v30 }
 0x5b1   :  { %vm1637_vm2 = vcmp.ge.f32.partialorder %v1624_v43, %v2555_v16  ;;  %vm1638_vm3 = vcmp.ge.f32.partialorder %v1628_v44, %v2550_v11  ;;  %vm1639_vm4 = vcmp.ge.f32.partialorder %v1632_v45, %v2594_v54  ;;  %vm1640_vm5 = vcmp.ge.f32.partialorder %v1636_v46, %v2589_v51 }
 0x5b2   :  { %v1870_v50 = vsel %vm1637_vm2, 1.0, %v2268_v0  ;;  %v1871_v9 = vsel %vm1638_vm3, 1.0, %v2268_v0  ;;  %v1872_v52 = vsel %vm1639_vm4, 1.0, %v2268_v0  ;;  %v1873_v19 = vsel %vm1640_vm5, 1.0, %v2268_v0 }
 0x5b3   :  { %v1649_v53 = vadd.f32 %v1870_v50, %v1609_v34  ;;  %v1650_v55 = vadd.f32 %v1871_v9, %v1610_v35  ;;  %v1651_v56 = vadd.f32 %v1872_v52, %v1611_v36  ;;  %v1652_v58 = vadd.f32 %v1873_v19, %v1612_v37 }
 0x5b4   :  { %v1653_v59 = vmul.f32 %v1870_v50, %v1624_v43  ;;  %v1654_v60 = vmul.f32 %v1871_v9, %v1628_v44  ;;  %v1655_v61 = vmul.f32 %v1872_v52, %v1632_v45  ;;  %v1656_v2 = vmul.f32 %v1873_v19, %v1636_v46 }
 0x5b5   :  { %v1661_v3 = vmul.f32 %v1649_v53, %v2555_v16  ;;  %v1662_v5 = vmul.f32 %v1650_v55, %v2550_v11  ;;  %v1663_v7 = vmul.f32 %v1651_v56, %v2594_v54  ;;  %v1664_v12 = vmul.f32 %v1652_v58, %v2589_v51 }
 0x5b6   :  { %v1657_v62 = vadd.f32 %v1653_v59, %v1617_v47  ;;  %v1658_v63 = vadd.f32 %v1654_v60, %v1618_v48  ;;  %v1659_v1 = vadd.f32 %v1655_v61, %v1619_v42  ;;  %v1660_v57 = vadd.f32 %v1656_v2, %v1620_v49 }
 0x5b7   :  { %v1665_v13 = vadd.f32 1.0, %v1661_v3  ;;  %v1666_v4 = vadd.f32 1.0, %v1662_v5  ;;  %v1667_v15 = vadd.f32 1.0, %v1663_v7  ;;  %v1668_v17 = vadd.f32 1.0, %v1664_v12 }
 0x5b9   :  { %vm1669_vm6 = vcmp.gt.f32.partialorder %v1665_v13, %v1657_v62  ;;  %vm1670_vm7 = vcmp.gt.f32.partialorder %v1666_v4, %v1658_v63  ;;  %vm1671_vm8 = vcmp.gt.f32.partialorder %v1667_v15, %v1659_v1  ;;  %vm1672_vm9 = vcmp.gt.f32.partialorder %v1668_v17, %v1660_v57 }
 0x5ba   :  { %v1874_v20 = vsel %vm1669_vm6, 1.0, %v2268_v0  ;;  %v1875_v21 = vsel %vm1670_vm7, 1.0, %v2268_v0  ;;  %v1876_v22 = vsel %vm1671_vm8, 1.0, %v2268_v0  ;;  %v1877_v23 = vsel %vm1672_vm9, 1.0, %v2268_v0 }
 0x5bb   :  { %v1681_v8 = vsel %vm108_vm1, %v1874_v20, 0.0  ;;  %v1688_v24 = vsel %vm108_vm1, %v1875_v21, 0.0  ;;  %v1695_v25 = vsel %vm108_vm1, %v1876_v22, 0.0  ;;  %v1702_v6 = vsel %vm108_vm1, %v1877_v23, 0.0 }
 0x5bc   :  { %v1682_v10 = vrot.slane %v1681_v8, 4  ;;  %v1689_v14 = vrot.slane %v1688_v24, 4  ;;  %v1696_v26 = vrot.slane %v1695_v25, 4  ;;  %v1703_v27 = vrot.slane %v1702_v6, 4 }
 0x5bd   :  { %v1709_v28 = vmul.f32 %v1874_v20, %v2555_v16  ;;  %v1710_v29 = vmul.f32 %v1875_v21, %v2550_v11  ;;  %v1711_v30 = vmul.f32 %v1876_v22, %v2594_v54  ;;  %v1712_v0 = vmul.f32 %v1877_v23, %v2589_v51 }
 0x5be   :  { %v1683_v31 = vadd.f32 %v1682_v10, %v1681_v8  ;;  %v1690_v32 = vadd.f32 %v1689_v14, %v1688_v24  ;;  %v1697_v33 = vadd.f32 %v1696_v26, %v1695_v25  ;;  %v1704_v18 = vadd.f32 %v1703_v27, %v1702_v6 }
 0x5bf   :  { %v1713_v34 = vsel %vm108_vm1, %v1709_v28, 0.0  ;;  %v1720_v35 = vsel %vm108_vm1, %v1710_v29, 0.0  ;;  %v1727_v36 = vsel %vm108_vm1, %v1711_v30, 0.0  ;;  %v1734_v37 = vsel %vm108_vm1, %v1712_v0, 0.0 }
 0x5c0   :  { %v1684_v38 = vrot.slane %v1683_v31, 2  ;;  %v1691_v39 = vrot.slane %v1690_v32, 2  ;;  %v1698_v40 = vrot.slane %v1697_v33, 2  ;;  %v1705_v41 = vrot.slane %v1704_v18, 2 }
 0x5c1   :  { %v1714_v43 = vrot.slane %v1713_v34, 4  ;;  %v1721_v44 = vrot.slane %v1720_v35, 4  ;;  %v1728_v45 = vrot.slane %v1727_v36, 4  ;;  %v1735_v46 = vrot.slane %v1734_v37, 4 }
 0x5c2   :  { %v1685_v47 = vadd.f32 %v1684_v38, %v1683_v31  ;;  %v1692_v48 = vadd.f32 %v1691_v39, %v1690_v32  ;;  %v1699_v42 = vadd.f32 %v1698_v40, %v1697_v33  ;;  %v1706_v49 = vadd.f32 %v1705_v41, %v1704_v18 }
 0x5c3   :  { %v1715_v50 = vadd.f32 %v1714_v43, %v1713_v34  ;;  %v1722_v9 = vadd.f32 %v1721_v44, %v1720_v35  ;;  %v1729_v52 = vadd.f32 %v1728_v45, %v1727_v36  ;;  %v1736_v19 = vadd.f32 %v1735_v46, %v1734_v37 }
 0x5c4   :  { %v1686_v53 = vrot.slane %v1685_v47, 1  ;;  %v1693_v55 = vrot.slane %v1692_v48, 1  ;;  %v1700_v56 = vrot.slane %v1699_v42, 1  ;;  %v1707_v3 = vrot.slane %v1706_v49, 1 }
 0x5c5   :  { %v1716_v58 = vrot.slane %v1715_v50, 2  ;;  %v1723_v59 = vrot.slane %v1722_v9, 2  ;;  %v1730_v60 = vrot.slane %v1729_v52, 2  ;;  %v1737_v12 = vrot.slane %v1736_v19, 2 }
 0x5c6   :  { %v1687_v61 = vadd.f32 %v1686_v53, %v1685_v47  ;;  %v1694_v2 = vadd.f32 %v1693_v55, %v1692_v48  ;;  %v1701_v62 = vadd.f32 %v1700_v56, %v1699_v42  ;;  %v1708_v57 = vadd.f32 %v1707_v3, %v1706_v49 }
 0x5c7   :  { %v1717_v5 = vadd.f32 %v1716_v58, %v1715_v50  ;;  %v1724_v7 = vadd.f32 %v1723_v59, %v1722_v9  ;;  %v1731_v1 = vadd.f32 %v1730_v60, %v1729_v52  ;;  %v1738_v4 = vadd.f32 %v1737_v12, %v1736_v19 }
 0x5c8   :  { %2110 = vrcp.f32 %v1687_v61 }
 0x5c9   :  { %v1718_v63 = vrot.slane %v1717_v5, 1  ;;  %2112 = vrcp.f32 %v1694_v2  ;;  %v1725_v13 = vrot.slane %v1724_v7, 1  ;;  %v1732_v17 = vrot.slane %v1731_v1, 1 }
 0x5ca   :  { %2114 = vrcp.f32 %v1701_v62  ;;  %v1739_v21 = vrot.slane %v1738_v4, 1 }
 0x5cb   :  { %v1719_v15 = vadd.f32 %v1718_v63, %v1717_v5  ;;  %2116 = vrcp.f32 %v1708_v57  ;;  %v1726_v20 = vadd.f32 %v1725_v13, %v1724_v7  ;;  %v1733_v22 = vadd.f32 %v1732_v17, %v1731_v1 }
 0x5cc   :  { %v1740_v24 = vadd.f32 %v1739_v21, %v1738_v4 }
 0x5cd   :  { %v1878_v23 = vadd.f32 -1.0, %v1719_v15  ;;  %v1879_v25 = vadd.f32 -1.0, %v1726_v20  ;;  %v1880_v14 = vadd.f32 -1.0, %v1733_v22 }
 0x5ce   :  { %v1881_v29 = vadd.f32 -1.0, %v1740_v24 }
 0x5d2   :  { %v2111_v8 = vpop.eup %2110 }
 0x5d3   :  { %v1746_v6 = vmul.f32 %v2111_v8, %v1878_v23  ;;  %v2113_v10 = vpop.eup %2112 }
 0x5d4   :  { %v1748_v26 = vmul.f32 %v2113_v10, %v1879_v25  ;;  %v2115_v28 = vpop.eup %2114 }
 0x5d5   :  { %v1753_v27 = vsub.f32 %v2555_v16, %v1746_v6  ;;  %v1750_v30 = vmul.f32 %v2115_v28, %v1880_v14  ;;  %v2117_v32 = vpop.eup %2116 }
 0x5d6   :  { %v1754_v0 = vsub.f32 %v2550_v11, %v1748_v26  ;;  %v1752_v33 = vmul.f32 %v2117_v32, %v1881_v29 }
 0x5d7   :  { %v1757_v31 = vmax.f32 %v1753_v27, 0.0  ;;  %v1755_v18 = vsub.f32 %v2594_v54, %v1750_v30 }
 0x5d8   :  { %v1758_v34 = vmax.f32 %v1754_v0, 0.0  ;;  %v1756_v35 = vsub.f32 %v2589_v51, %v1752_v33 }
 0x5d9   :  { %1761 = vst.msk [vmem:[#allocation10] sm:$0xff] %vm108_vm1, %v1757_v31  ;;  %v1759_v36 = vmax.f32 %v1755_v18, 0.0 }
 0x5da   :  { %1762 = vst.msk [vmem:[#allocation10 + $0x8] sm:$0xff] %vm108_vm1, %v1758_v34  ;;  %v1760_v16 = vmax.f32 %v1756_v35, 0.0 }
 0x5db   :  { %1763 = vst.msk [vmem:[#allocation10 + $0x10] sm:$0xff] %vm108_vm1, %v1759_v36 }
 0x5dc   :  { %1764 = vst.msk [vmem:[#allocation10 + $0x18] sm:$0xff] %vm108_vm1, %v1760_v16 }
 0x5dd   :  { %2239 = shalt.err (!%p2236_p2)
}
 0x5de   :  { %s2240_s24 = scalar_lea.hbm %s2748_s6, 512 }
 0x5df   :  { %p2241_p3 = scmp.ne.s32.totalorder %s2748_s6, %s2240_s24  ;;  %p2244_p4 = scmp.lt.u32.totalorder %s2240_s24, %s2748_s6 }
 0x5e1   :  { %p2246_p5 = pnand %p2244_p4, %p2241_p3 }
 0x5e3   :  { %2249 = shalt.err (!%p2246_p5)
}
 0x5e4   :  { %1780 = dma.vmem_to_hbm [thread:$0]  %s1775_s20, 512, %s2748_s6, [#allocation4], %s2261_s11, %s2261_s11, %s2262_s12  }
 0x5e5   :  { %2256 = dma.done.wait [#allocation4], 512  }
 0x5e6   :  { %2257 = vsyncadd [#allocation4], 4294966784 }
 0x5e7   :  { %2258 = dma.done.wait [#allocation12], 512  }
 0x5e8   :  { %2259 = vsyncadd [#allocation12], 4294966784 }
 0x5e9   :  { %1799 = vsyncpa [#allocation3], 1 }
 0x5ea   :  { %1800 = vsyncpa [#allocation6], 1 }
 0x5eb   :  { %1801 = vsyncpa [#allocation9], 1 }
 0x5ec   :  { %1802 = vsyncpa [#allocation4], 1 }
 0x5ed   :  { %1803 = vsyncpa [#allocation12], 1 }

</bundles_post_ra>
